<compile_context>
chip_gen: v7x
topology: tpu7x:2x2x1
jax: 0.10.0
libtpu: 0.0.40
codegen_flags: <defaults>
</compile_context>

<pallas_src>
import jax
import jax.numpy as jnp
from jax.experimental import pallas as pl
from jax.experimental.pallas import tpu as pltpu

SMOOTH = 1.0  # SoftDiceLoss default


def _make_dice_stats_kernel(C, S, TSsub, KH, chain_bf16, needs_mask):
    """Accumulates per-(split, b, c) tp / sum(p) / label-count statistics."""
    TILE = TSsub * 128  # spatial positions per tile

    def kernel(logits_ref, labels_ref, tp_ref, sp_ref, vol_ref):
        s = pl.program_id(0)   # TensorCore split of the spatial tile range
        k = pl.program_id(2)   # spatial tile within this split (reduction ax.)

        @pl.when(k == 0)
        def _init():
            tp_ref[...] = jnp.zeros_like(tp_ref)
            sp_ref[...] = jnp.zeros_like(sp_ref)
            vol_ref[...] = jnp.zeros_like(vol_ref)

        x = logits_ref[0]                                # (C, TSsub, 128)
        if not chain_bf16:
            x = x.astype(jnp.float32)

        # Softmax over channels = C full-occupancy elementwise slabs.
        m = jnp.max(x, axis=0, keepdims=True)            # C-1 elementwise maxes
        e = jnp.exp(x - m)                               # EUP (bf16 on v6e/v7x)
        e32 = e.astype(jnp.float32)                      # accumulate in f32
        denom = jnp.sum(e32, axis=0, keepdims=True)      # (1, TSsub, 128)
        inv = pl.reciprocal(denom, approx=True)          # EUP slot
        inv = inv * (2.0 - denom * inv)                  # one Newton step
        p32 = e32 * inv                                  # (C, TSsub, 128) f32

        lbl = labels_ref[0, 0].astype(jnp.int32)         # (TSsub, 128)

        def accum(valid):
            # Per-class loop: C is small (2-8), static unroll is free.
            for c in range(C):
                pc = p32[c]                              # (TSsub, 128)
                yc = lbl == c                            # fused one-hot
                if valid is not None:
                    pc = jnp.where(valid, pc, 0.0)       # select: NaN-safe vs
                    yc = jnp.logical_and(yc, valid)      # undefined padding
                # Lane-dense (128,) rows; final lane reduce happens in glue.
                tp_ref[0, 0, c, :] += jnp.sum(jnp.where(yc, pc, 0.0), axis=0)
                sp_ref[0, 0, c, :] += jnp.sum(pc, axis=0)
                vol_ref[0, 0, c, :] += jnp.sum(yc.astype(jnp.float32), axis=0)

        if needs_mask:
            gk = s * KH + k                              # global spatial tile
            is_ragged = (gk + 1) * TILE > S

            @pl.when(jnp.logical_not(is_ragged))
            def _full_tile():
                accum(None)                              # no masking cost

            @pl.when(is_ragged)
            def _ragged_tile():
                row = jax.lax.broadcasted_iota(jnp.int32, (TSsub, 128), 0)
                lane = jax.lax.broadcasted_iota(jnp.int32, (TSsub, 128), 1)
                pos = (gk * TSsub + row) * 128 + lane
                accum(pos < S)
        else:
            accum(None)

    return kernel


def soft_dice_loss(net_output, target, w, *, smooth=SMOOTH,
                   ts_target=65536, bf16_chain=None):
    """SoftDiceLoss.forward (softmax nonlin, batch_dice=False, do_bg=True).

    net_output: (B, C, *spatial) float logits (f32 or bf16, native dtype).
    target:     (B, 1, *spatial) (or (B, *spatial)) integer label map.
    w:          per-class weights, shape (C,).
    ts_target:  spatial positions per tile; sweep 16K-128K, larger is better
                until the explicit VMEM cap bites (same on v7x).
    """
    # TODO(synk): pre-one-hot targets and loss_mask (both optional in the
    # PyTorch module) are not implemented; label-map targets only.
    B, C = int(net_output.shape[0]), int(net_output.shape[1])
    S = 1
    for d in net_output.shape[2:]:
        S *= int(d)
    assert int(target.size) == B * S, "expected a (B, 1, *spatial) label map"

    # --- layout: spatial -> (rows, 128) so positions fill sublanes AND lanes
    S_rows = pl.cdiv(S, 128)
    S128 = S_rows * 128
    label_dtype = jnp.int8 if C <= 127 else jnp.int32
    logits = net_output.reshape(B, C, S)                 # native dtype
    labels = target.reshape(B, S).astype(label_dtype)
    if S128 != S:  # pad the minor axis to a lane multiple; values are masked
        logits = jnp.pad(logits, ((0, 0), (0, 0), (0, S128 - S)))
        labels = jnp.pad(labels, ((0, 0), (0, S128 - S)))
    logits4 = logits.reshape(B, C, S_rows, 128)
    labels4 = labels.reshape(B, 1, S_rows, 128)

    # --- spatial tile: as big as reasonable (grid-step overhead, not VMEM,
    #     is the constraint for nnUNet-sized volumes).
    ts_sub_target = max(8, int(ts_target) // 128)
    if S_rows <= ts_sub_target:
        TSsub = S_rows                                   # single full block
    else:
        TSsub = max(32, (ts_sub_target // 32) * 32)      # /32 for int8 labels
        if TSsub >= S_rows:
            TSsub = S_rows
    num_k = pl.cdiv(S_rows, TSsub)

    # --- split the spatial-tile range across 2 TensorCores (helps v7x when
    #     B is small); purely sequential (harmless) on single-TC chips.
    num_splits = 2 if num_k >= 2 else 1
    KH = pl.cdiv(num_k, num_splits)
    clamp = num_splits * KH > num_k        # odd tile count -> one overhang tile
    needs_mask = (num_splits * KH * TSsub * 128) != S

    # bf16 elementwise/exp chain only where the VPU/EUP supports it natively.
    if bf16_chain is None:
        if net_output.dtype == jnp.bfloat16:
            try:
                kind = jax.devices()[0].device_kind.lower()
            except Exception:
                kind = ""
            bf16_chain = not ("v5 lite" in kind or "v5e" in kind
                              or "v5lite" in kind)
        else:
            bf16_chain = False
    chain_bf16 = bool(bf16_chain) and net_output.dtype == jnp.bfloat16

    def sp_block(split, k):
        gk = split * KH + k
        if clamp:
            # Overhang tile re-reads the last real block; its contribution is
            # fully masked away in-kernel (pos >= S), so this is safe.
            gk = jnp.minimum(gk, num_k - 1)
        return gk

    kernel = _make_dice_stats_kernel(C, S, TSsub, KH, chain_bf16, needs_mask)

    # Explicit VMEM cap: big tiles + v5e's 16 MiB scoped default would
    # under-provision; 32-48 MiB fits every generation (v7x physical 64 MiB).
    tile_in_bytes = (C * TSsub * 128 * logits4.dtype.itemsize
                     + TSsub * 128 * labels4.dtype.itemsize)
    vmem_needed = 4 * tile_in_bytes + 8 * C * TSsub * 128 * 4 + (2 << 20)
    vmem_limit = int(min(48 << 20, max(32 << 20, vmem_needed)))

    cost = pl.CostEstimate(
        flops=int(12 * B * C * S),
        transcendentals=int(B * C * S + B * S),
        bytes_accessed=int(B * C * S * logits4.dtype.itemsize
                           + B * S * labels4.dtype.itemsize
                           + 3 * num_splits * B * C * 128 * 4),
    )

    stat_shape = jax.ShapeDtypeStruct((num_splits, B, C, 128), jnp.float32)
    out_spec = pl.BlockSpec((1, 1, C, 128), lambda s, b, k: (s, b, 0, 0))
    tp4, sp4, vol4 = pl.pallas_call(
        kernel,
        out_shape=(stat_shape, stat_shape, stat_shape),
        grid=(num_splits, B, KH),
        in_specs=[
            pl.BlockSpec((1, C, TSsub, 128),
                         lambda s, b, k: (b, 0, sp_block(s, k), 0)),
            pl.BlockSpec((1, 1, TSsub, 128),
                         lambda s, b, k: (b, 0, sp_block(s, k), 0)),
        ],
        out_specs=(out_spec, out_spec, out_spec),
        compiler_params=pltpu.CompilerParams(
            dimension_semantics=("parallel", "parallel", "arbitrary"),
            vmem_limit_bytes=vmem_limit),
        cost_estimate=cost,
    )(logits4, labels4)

    # --- O(B*C) finalization in plain JAX
    tp = jnp.sum(tp4, axis=(0, 3))                       # (B, C)
    sum_p = jnp.sum(sp4, axis=(0, 3))
    vol = jnp.sum(vol4, axis=(0, 3))
    fp = sum_p - tp                                      # sum_s p*(1-y)
    fn = vol - tp                                        # sum_s (1-p)*y
    nominator = 2.0 * tp + smooth
    denominator = 2.0 * tp + fp + fn + smooth
    dc = (nominator / denominator) * jnp.asarray(w, jnp.float32)
    # batch_dice=True / do_bg=False variants are trivial glue-side changes
    # since per-(b, c) statistics are available here.
    return -(dc.sum(axis=1).mean())


def _reference_soft_dice_loss(net_output, target, w, smooth=SMOOTH):
    """Pure-JAX reference matching the PyTorch module (for verification)."""
    x = jax.nn.softmax(net_output.astype(jnp.float32), axis=1)
    C = net_output.shape[1]
    y_onehot = jax.nn.one_hot(target[:, 0].astype(jnp.int32), C, axis=1,
                              dtype=jnp.float32)
    axes = tuple(range(2, net_output.ndim))
    tp = jnp.sum(x * y_onehot, axes)
    fp = jnp.sum(x * (1.0 - y_onehot), axes)
    fn = jnp.sum((1.0 - x) * y_onehot, axes)
    nominator = 2.0 * tp + smooth
    denominator = 2.0 * tp + fp + fn + smooth
    dc = (nominator / denominator) * w
    return -(dc.sum(axis=1).mean())


if __name__ == "__main__":
    key = jax.random.PRNGKey(0)
    ks = jax.random.split(key, 8)
    B, C = 2, 4
    w = jax.random.uniform(ks[0], (C,), minval=0.5, maxval=1.5,
                           dtype=jnp.float32)

    # 1) small 2D case: single spatial tile, no masking path
    x1 = jax.random.normal(ks[1], (B, C, 16, 16), dtype=jnp.float32)
    y1 = jax.random.randint(ks[2], (B, 1, 16, 16), 0, C, dtype=jnp.int32)
    loss1 = soft_dice_loss(x1, y1, w)
    jax.block_until_ready(loss1)
    ref1 = _reference_soft_dice_loss(x1, y1, w)
    assert jnp.allclose(loss1, ref1, atol=1e-3, rtol=1e-3), (loss1, ref1)

    # 2) S % 128 != 0: wrapper lane-pad + in-kernel ragged mask
    x2 = jax.random.normal(ks[3], (B, C, 20, 20), dtype=jnp.float32)
    y2 = jax.random.randint(ks[4], (B, 1, 20, 20), 0, C, dtype=jnp.int32)
    loss2 = soft_dice_loss(x2, y2, w)
    jax.block_until_ready(loss2)
    ref2 = _reference_soft_dice_loss(x2, y2, w)
    assert jnp.allclose(loss2, ref2, atol=1e-3, rtol=1e-3), (loss2, ref2)

    # 3) 3D volume: multi-tile spatial axis, 2-way TensorCore split, odd tile
    #    count (clamped overhang tile) and a ragged last tile
    x3 = jax.random.normal(ks[5], (B, C, 8, 40, 32), dtype=jnp.float32)
    y3 = jax.random.randint(ks[6], (B, 1, 8, 40, 32), 0, C, dtype=jnp.int32)
    loss3 = soft_dice_loss(x3, y3, w, ts_target=4096)
    jax.block_until_ready(loss3)
    ref3 = _reference_soft_dice_loss(x3, y3, w)
    assert jnp.allclose(loss3, ref3, atol=1e-3, rtol=1e-3), (loss3, ref3)

    # 4) bf16 logits pass-through (bf16 exp chain on v6e/v7x, f32 accumulators)
    loss4 = soft_dice_loss(x3.astype(jnp.bfloat16), y3, w, ts_target=4096)
    jax.block_until_ready(loss4)
    assert jnp.allclose(loss4, ref3, atol=2e-2, rtol=2e-2), (loss4, ref3)

    print("KERNEL_OK")
</pallas_src>

<mosaic_0001>
module attributes {stable_mosaic.version = 11 : i64} {
  func.func @kernel(%arg0: i32, %arg1: i32, %arg2: i32, %arg3: memref<1x4x2x128xf32, #tpu.memory_space<vmem>>, %arg4: memref<1x1x2x128xi8, #tpu.memory_space<vmem>>, %arg5: memref<1x1x4x128xf32, #tpu.memory_space<vmem>>, %arg6: memref<1x1x4x128xf32, #tpu.memory_space<vmem>>, %arg7: memref<1x1x4x128xf32, #tpu.memory_space<vmem>>) attributes {dimension_semantics = [#tpu.dimension_semantics<parallel>, #tpu.dimension_semantics<parallel>, #tpu.dimension_semantics<arbitrary>], iteration_bounds = array<i64: 1, 2, 1>, scalar_prefetch = 0 : i64, scratch_operands = 0 : i64, tpu.core_type = #tpu.core_type<tc>, window_params = [{transform_indices = @transform_0, window_bounds = array<i64: 1, 4, 2, 128>}, {transform_indices = @transform_1, window_bounds = array<i64: 1, 1, 2, 128>}, {transform_indices = @transform_2, window_bounds = array<i64: 1, 1, 4, 128>}, {transform_indices = @transform_3, window_bounds = array<i64: 1, 1, 4, 128>}, {transform_indices = @transform_4, window_bounds = array<i64: 1, 1, 4, 128>}]} {
    %c0_i32 = arith.constant 0 : i32
    %0 = arith.cmpi eq, %arg2, %c0_i32 : i32
    %1 = arith.extui %0 : i1 to i32
    %c0_i32_0 = arith.constant 0 : i32
    %2 = arith.cmpi ne, %1, %c0_i32_0 : i32
    scf.if %2 {
      %cst_120 = arith.constant 0.000000e+00 : f32
      %138 = vector.broadcast %cst_120 : f32 to vector<1x1x4x128xf32>
      %c0_121 = arith.constant 0 : index
      %c0_122 = arith.constant 0 : index
      %c0_123 = arith.constant 0 : index
      %c0_124 = arith.constant 0 : index
      %139 = vector.load %arg5[%c0_121, %c0_122, %c0_123, %c0_124] : memref<1x1x4x128xf32, #tpu.memory_space<vmem>>, vector<1x1x4x128xf32>
      tpu.vector_store %arg5[%c0_121, %c0_122, %c0_123, %c0_124], %138 {strides = array<i32>} : memref<1x1x4x128xf32, #tpu.memory_space<vmem>>, vector<1x1x4x128xf32>,
      %cst_125 = arith.constant 0.000000e+00 : f32
      %140 = vector.broadcast %cst_125 : f32 to vector<1x1x4x128xf32>
      %c0_126 = arith.constant 0 : index
      %c0_127 = arith.constant 0 : index
      %c0_128 = arith.constant 0 : index
      %c0_129 = arith.constant 0 : index
      %141 = vector.load %arg6[%c0_126, %c0_127, %c0_128, %c0_129] : memref<1x1x4x128xf32, #tpu.memory_space<vmem>>, vector<1x1x4x128xf32>
      tpu.vector_store %arg6[%c0_126, %c0_127, %c0_128, %c0_129], %140 {strides = array<i32>} : memref<1x1x4x128xf32, #tpu.memory_space<vmem>>, vector<1x1x4x128xf32>,
      %cst_130 = arith.constant 0.000000e+00 : f32
      %142 = vector.broadcast %cst_130 : f32 to vector<1x1x4x128xf32>
      %c0_131 = arith.constant 0 : index
      %c0_132 = arith.constant 0 : index
      %c0_133 = arith.constant 0 : index
      %c0_134 = arith.constant 0 : index
      %143 = vector.load %arg7[%c0_131, %c0_132, %c0_133, %c0_134] : memref<1x1x4x128xf32, #tpu.memory_space<vmem>>, vector<1x1x4x128xf32>
      tpu.vector_store %arg7[%c0_131, %c0_132, %c0_133, %c0_134], %142 {strides = array<i32>} : memref<1x1x4x128xf32, #tpu.memory_space<vmem>>, vector<1x1x4x128xf32>,
    } else {
    }
    %c0 = arith.constant 0 : index
    %c0_1 = arith.constant 0 : index
    %c0_2 = arith.constant 0 : index
    %c0_3 = arith.constant 0 : index
    %3 = vector.load %arg3[%c0, %c0_1, %c0_2, %c0_3] : memref<1x4x2x128xf32, #tpu.memory_space<vmem>>, vector<1x4x2x128xf32>
    %4 = vector.shape_cast %3 : vector<1x4x2x128xf32> to vector<4x2x128xf32>
    %cst = arith.constant dense<0xFF800000> : vector<2x128xf32>
    %5 = vector.multi_reduction <maximumf>, %4, %cst [0] : vector<4x2x128xf32> to vector<2x128xf32>
    %6 = vector.shape_cast %5 : vector<2x128xf32> to vector<1x2x128xf32>
    %7 = vector.broadcast %6 : vector<1x2x128xf32> to vector<4x2x128xf32>
    %8 = arith.subf %4, %7 : vector<4x2x128xf32>
    %9 = math.exp %8 : vector<4x2x128xf32>
    %cst_4 = arith.constant dense<0.000000e+00> : vector<2x128xf32>
    %10 = vector.multi_reduction <add>, %9, %cst_4 [0] : vector<4x2x128xf32> to vector<2x128xf32>
    %11 = vector.shape_cast %10 : vector<2x128xf32> to vector<1x2x128xf32>
    %12 = tpu.reciprocal %11 {approx = true} : vector<1x2x128xf32> -> vector<1x2x128xf32>
    %13 = arith.mulf %11, %12 : vector<1x2x128xf32>
    %cst_5 = arith.constant 2.000000e+00 : f32
    %14 = vector.broadcast %cst_5 : f32 to vector<1x2x128xf32>
    %15 = arith.subf %14, %13 : vector<1x2x128xf32>
    %16 = arith.mulf %12, %15 : vector<1x2x128xf32>
    %17 = vector.broadcast %16 : vector<1x2x128xf32> to vector<4x2x128xf32>
    %18 = arith.mulf %9, %17 : vector<4x2x128xf32>
    %c0_6 = arith.constant 0 : index
    %c0_7 = arith.constant 0 : index
    %c0_8 = arith.constant 0 : index
    %c0_9 = arith.constant 0 : index
    %19 = vector.load %arg4[%c0_6, %c0_7, %c0_8, %c0_9] : memref<1x1x2x128xi8, #tpu.memory_space<vmem>>, vector<1x1x2x128xi8>
    %20 = vector.shape_cast %19 : vector<1x1x2x128xi8> to vector<2x128xi8>
    %21 = arith.extsi %20 : vector<2x128xi8> to vector<2x128xi32>
    %22 = vector.extract_strided_slice %18 {offsets = [0, 0, 0], sizes = [1, 2, 128], strides = [1, 1, 1]} : vector<4x2x128xf32> to vector<1x2x128xf32>
    %23 = vector.shape_cast %22 : vector<1x2x128xf32> to vector<2x128xf32>
    %c0_i32_10 = arith.constant 0 : i32
    %24 = vector.broadcast %c0_i32_10 : i32 to vector<2x128xi32>
    %25 = arith.cmpi eq, %21, %24 : vector<2x128xi32>
    %c0_11 = arith.constant 0 : index
    %c0_12 = arith.constant 0 : index
    %c0_13 = arith.constant 0 : index
    %c0_14 = arith.constant 0 : index
    %26 = vector.load %arg5[%c0_11, %c0_12, %c0_13, %c0_14] : memref<1x1x4x128xf32, #tpu.memory_space<vmem>>, vector<1x1x1x128xf32>
    %27 = vector.shape_cast %26 : vector<1x1x1x128xf32> to vector<128xf32>
    %cst_15 = arith.constant 0.000000e+00 : f32
    %28 = vector.broadcast %cst_15 : f32 to vector<2x128xf32>
    %29 = arith.select %25, %23, %28 : vector<2x128xi1>, vector<2x128xf32>
    %cst_16 = arith.constant dense<0.000000e+00> : vector<128xf32>
    %30 = vector.multi_reduction <add>, %29, %cst_16 [0] : vector<2x128xf32> to vector<128xf32>
    %31 = arith.addf %27, %30 : vector<128xf32>
    %c0_17 = arith.constant 0 : index
    %c0_18 = arith.constant 0 : index
    %c0_19 = arith.constant 0 : index
    %c0_20 = arith.constant 0 : index
    %32 = vector.load %arg5[%c0_17, %c0_18, %c0_19, %c0_20] : memref<1x1x4x128xf32, #tpu.memory_space<vmem>>, vector<1x1x1x128xf32>
    %33 = vector.shape_cast %32 : vector<1x1x1x128xf32> to vector<128xf32>
    %34 = vector.shape_cast %31 : vector<128xf32> to vector<1x1x1x128xf32>
    tpu.vector_store %arg5[%c0_17, %c0_18, %c0_19, %c0_20], %34 {strides = array<i32>} : memref<1x1x4x128xf32, #tpu.memory_space<vmem>>, vector<1x1x1x128xf32>,
    %c0_21 = arith.constant 0 : index
    %c0_22 = arith.constant 0 : index
    %c0_23 = arith.constant 0 : index
    %c0_24 = arith.constant 0 : index
    %35 = vector.load %arg6[%c0_21, %c0_22, %c0_23, %c0_24] : memref<1x1x4x128xf32, #tpu.memory_space<vmem>>, vector<1x1x1x128xf32>
    %36 = vector.shape_cast %35 : vector<1x1x1x128xf32> to vector<128xf32>
    %cst_25 = arith.constant dense<0.000000e+00> : vector<128xf32>
    %37 = vector.multi_reduction <add>, %23, %cst_25 [0] : vector<2x128xf32> to vector<128xf32>
    %38 = arith.addf %36, %37 : vector<128xf32>
    %c0_26 = arith.constant 0 : index
    %c0_27 = arith.constant 0 : index
    %c0_28 = arith.constant 0 : index
    %c0_29 = arith.constant 0 : index
    %39 = vector.load %arg6[%c0_26, %c0_27, %c0_28, %c0_29] : memref<1x1x4x128xf32, #tpu.memory_space<vmem>>, vector<1x1x1x128xf32>
    %40 = vector.shape_cast %39 : vector<1x1x1x128xf32> to vector<128xf32>
    %41 = vector.shape_cast %38 : vector<128xf32> to vector<1x1x1x128xf32>
    tpu.vector_store %arg6[%c0_26, %c0_27, %c0_28, %c0_29], %41 {strides = array<i32>} : memref<1x1x4x128xf32, #tpu.memory_space<vmem>>, vector<1x1x1x128xf32>,
    %c0_30 = arith.constant 0 : index
    %c0_31 = arith.constant 0 : index
    %c0_32 = arith.constant 0 : index
    %c0_33 = arith.constant 0 : index
    %42 = vector.load %arg7[%c0_30, %c0_31, %c0_32, %c0_33] : memref<1x1x4x128xf32, #tpu.memory_space<vmem>>, vector<1x1x1x128xf32>
    %43 = vector.shape_cast %42 : vector<1x1x1x128xf32> to vector<128xf32>
    %44 = arith.extui %25 : vector<2x128xi1> to vector<2x128xi32>
    %45 = arith.sitofp %44 : vector<2x128xi32> to vector<2x128xf32>
    %cst_34 = arith.constant dense<0.000000e+00> : vector<128xf32>
    %46 = vector.multi_reduction <add>, %45, %cst_34 [0] : vector<2x128xf32> to vector<128xf32>
    %47 = arith.addf %43, %46 : vector<128xf32>
    %c0_35 = arith.constant 0 : index
    %c0_36 = arith.constant 0 : index
    %c0_37 = arith.constant 0 : index
    %c0_38 = arith.constant 0 : index
    %48 = vector.load %arg7[%c0_35, %c0_36, %c0_37, %c0_38] : memref<1x1x4x128xf32, #tpu.memory_space<vmem>>, vector<1x1x1x128xf32>
    %49 = vector.shape_cast %48 : vector<1x1x1x128xf32> to vector<128xf32>
    %50 = vector.shape_cast %47 : vector<128xf32> to vector<1x1x1x128xf32>
    tpu.vector_store %arg7[%c0_35, %c0_36, %c0_37, %c0_38], %50 {strides = array<i32>} : memref<1x1x4x128xf32, #tpu.memory_space<vmem>>, vector<1x1x1x128xf32>,
    %51 = vector.extract_strided_slice %18 {offsets = [1, 0, 0], sizes = [1, 2, 128], strides = [1, 1, 1]} : vector<4x2x128xf32> to vector<1x2x128xf32>
    %52 = vector.shape_cast %51 : vector<1x2x128xf32> to vector<2x128xf32>
    %c1_i32 = arith.constant 1 : i32
    %53 = vector.broadcast %c1_i32 : i32 to vector<2x128xi32>
    %54 = arith.cmpi eq, %21, %53 : vector<2x128xi32>
    %c0_39 = arith.constant 0 : index
    %c0_40 = arith.constant 0 : index
    %c1 = arith.constant 1 : index
    %c0_41 = arith.constant 0 : index
    %55 = vector.load %arg5[%c0_39, %c0_40, %c1, %c0_41] : memref<1x1x4x128xf32, #tpu.memory_space<vmem>>, vector<1x1x1x128xf32>
    %56 = vector.shape_cast %55 : vector<1x1x1x128xf32> to vector<128xf32>
    %cst_42 = arith.constant 0.000000e+00 : f32
    %57 = vector.broadcast %cst_42 : f32 to vector<2x128xf32>
    %58 = arith.select %54, %52, %57 : vector<2x128xi1>, vector<2x128xf32>
    %cst_43 = arith.constant dense<0.000000e+00> : vector<128xf32>
    %59 = vector.multi_reduction <add>, %58, %cst_43 [0] : vector<2x128xf32> to vector<128xf32>
    %60 = arith.addf %56, %59 : vector<128xf32>
    %c0_44 = arith.constant 0 : index
    %c0_45 = arith.constant 0 : index
    %c1_46 = arith.constant 1 : index
    %c0_47 = arith.constant 0 : index
    %61 = vector.load %arg5[%c0_44, %c0_45, %c1_46, %c0_47] : memref<1x1x4x128xf32, #tpu.memory_space<vmem>>, vector<1x1x1x128xf32>
    %62 = vector.shape_cast %61 : vector<1x1x1x128xf32> to vector<128xf32>
    %63 = vector.shape_cast %60 : vector<128xf32> to vector<1x1x1x128xf32>
    tpu.vector_store %arg5[%c0_44, %c0_45, %c1_46, %c0_47], %63 {strides = array<i32>} : memref<1x1x4x128xf32, #tpu.memory_space<vmem>>, vector<1x1x1x128xf32>,
    %c0_48 = arith.constant 0 : index
    %c0_49 = arith.constant 0 : index
    %c1_50 = arith.constant 1 : index
    %c0_51 = arith.constant 0 : index
    %64 = vector.load %arg6[%c0_48, %c0_49, %c1_50, %c0_51] : memref<1x1x4x128xf32, #tpu.memory_space<vmem>>, vector<1x1x1x128xf32>
    %65 = vector.shape_cast %64 : vector<1x1x1x128xf32> to vector<128xf32>
    %cst_52 = arith.constant dense<0.000000e+00> : vector<128xf32>
    %66 = vector.multi_reduction <add>, %52, %cst_52 [0] : vector<2x128xf32> to vector<128xf32>
    %67 = arith.addf %65, %66 : vector<128xf32>
    %c0_53 = arith.constant 0 : index
    %c0_54 = arith.constant 0 : index
    %c1_55 = arith.constant 1 : index
    %c0_56 = arith.constant 0 : index
    %68 = vector.load %arg6[%c0_53, %c0_54, %c1_55, %c0_56] : memref<1x1x4x128xf32, #tpu.memory_space<vmem>>, vector<1x1x1x128xf32>
    %69 = vector.shape_cast %68 : vector<1x1x1x128xf32> to vector<128xf32>
    %70 = vector.shape_cast %67 : vector<128xf32> to vector<1x1x1x128xf32>
    tpu.vector_store %arg6[%c0_53, %c0_54, %c1_55, %c0_56], %70 {strides = array<i32>} : memref<1x1x4x128xf32, #tpu.memory_space<vmem>>, vector<1x1x1x128xf32>,
    %c0_57 = arith.constant 0 : index
    %c0_58 = arith.constant 0 : index
    %c1_59 = arith.constant 1 : index
    %c0_60 = arith.constant 0 : index
    %71 = vector.load %arg7[%c0_57, %c0_58, %c1_59, %c0_60] : memref<1x1x4x128xf32, #tpu.memory_space<vmem>>, vector<1x1x1x128xf32>
    %72 = vector.shape_cast %71 : vector<1x1x1x128xf32> to vector<128xf32>
    %73 = arith.extui %54 : vector<2x128xi1> to vector<2x128xi32>
    %74 = arith.sitofp %73 : vector<2x128xi32> to vector<2x128xf32>
    %cst_61 = arith.constant dense<0.000000e+00> : vector<128xf32>
    %75 = vector.multi_reduction <add>, %74, %cst_61 [0] : vector<2x128xf32> to vector<128xf32>
    %76 = arith.addf %72, %75 : vector<128xf32>
    %c0_62 = arith.constant 0 : index
    %c0_63 = arith.constant 0 : index
    %c1_64 = arith.constant 1 : index
    %c0_65 = arith.constant 0 : index
    %77 = vector.load %arg7[%c0_62, %c0_63, %c1_64, %c0_65] : memref<1x1x4x128xf32, #tpu.memory_space<vmem>>, vector<1x1x1x128xf32>
    %78 = vector.shape_cast %77 : vector<1x1x1x128xf32> to vector<128xf32>
    %79 = vector.shape_cast %76 : vector<128xf32> to vector<1x1x1x128xf32>
    tpu.vector_store %arg7[%c0_62, %c0_63, %c1_64, %c0_65], %79 {strides = array<i32>} : memref<1x1x4x128xf32, #tpu.memory_space<vmem>>, vector<1x1x1x128xf32>,
    %80 = vector.extract_strided_slice %18 {offsets = [2, 0, 0], sizes = [1, 2, 128], strides = [1, 1, 1]} : vector<4x2x128xf32> to vector<1x2x128xf32>
    %81 = vector.shape_cast %80 : vector<1x2x128xf32> to vector<2x128xf32>
    %c2_i32 = arith.constant 2 : i32
    %82 = vector.broadcast %c2_i32 : i32 to vector<2x128xi32>
    %83 = arith.cmpi eq, %21, %82 : vector<2x128xi32>
    %c0_66 = arith.constant 0 : index
    %c0_67 = arith.constant 0 : index
    %c2 = arith.constant 2 : index
    %c0_68 = arith.constant 0 : index
    %84 = vector.load %arg5[%c0_66, %c0_67, %c2, %c0_68] : memref<1x1x4x128xf32, #tpu.memory_space<vmem>>, vector<1x1x1x128xf32>
    %85 = vector.shape_cast %84 : vector<1x1x1x128xf32> to vector<128xf32>
    %cst_69 = arith.constant 0.000000e+00 : f32
    %86 = vector.broadcast %cst_69 : f32 to vector<2x128xf32>
    %87 = arith.select %83, %81, %86 : vector<2x128xi1>, vector<2x128xf32>
    %cst_70 = arith.constant dense<0.000000e+00> : vector<128xf32>
    %88 = vector.multi_reduction <add>, %87, %cst_70 [0] : vector<2x128xf32> to vector<128xf32>
    %89 = arith.addf %85, %88 : vector<128xf32>
    %c0_71 = arith.constant 0 : index
    %c0_72 = arith.constant 0 : index
    %c2_73 = arith.constant 2 : index
    %c0_74 = arith.constant 0 : index
    %90 = vector.load %arg5[%c0_71, %c0_72, %c2_73, %c0_74] : memref<1x1x4x128xf32, #tpu.memory_space<vmem>>, vector<1x1x1x128xf32>
    %91 = vector.shape_cast %90 : vector<1x1x1x128xf32> to vector<128xf32>
    %92 = vector.shape_cast %89 : vector<128xf32> to vector<1x1x1x128xf32>
    tpu.vector_store %arg5[%c0_71, %c0_72, %c2_73, %c0_74], %92 {strides = array<i32>} : memref<1x1x4x128xf32, #tpu.memory_space<vmem>>, vector<1x1x1x128xf32>,
    %c0_75 = arith.constant 0 : index
    %c0_76 = arith.constant 0 : index
    %c2_77 = arith.constant 2 : index
    %c0_78 = arith.constant 0 : index
    %93 = vector.load %arg6[%c0_75, %c0_76, %c2_77, %c0_78] : memref<1x1x4x128xf32, #tpu.memory_space<vmem>>, vector<1x1x1x128xf32>
    %94 = vector.shape_cast %93 : vector<1x1x1x128xf32> to vector<128xf32>
    %cst_79 = arith.constant dense<0.000000e+00> : vector<128xf32>
    %95 = vector.multi_reduction <add>, %81, %cst_79 [0] : vector<2x128xf32> to vector<128xf32>
    %96 = arith.addf %94, %95 : vector<128xf32>
    %c0_80 = arith.constant 0 : index
    %c0_81 = arith.constant 0 : index
    %c2_82 = arith.constant 2 : index
    %c0_83 = arith.constant 0 : index
    %97 = vector.load %arg6[%c0_80, %c0_81, %c2_82, %c0_83] : memref<1x1x4x128xf32, #tpu.memory_space<vmem>>, vector<1x1x1x128xf32>
    %98 = vector.shape_cast %97 : vector<1x1x1x128xf32> to vector<128xf32>
    %99 = vector.shape_cast %96 : vector<128xf32> to vector<1x1x1x128xf32>
    tpu.vector_store %arg6[%c0_80, %c0_81, %c2_82, %c0_83], %99 {strides = array<i32>} : memref<1x1x4x128xf32, #tpu.memory_space<vmem>>, vector<1x1x1x128xf32>,
    %c0_84 = arith.constant 0 : index
    %c0_85 = arith.constant 0 : index
    %c2_86 = arith.constant 2 : index
    %c0_87 = arith.constant 0 : index
    %100 = vector.load %arg7[%c0_84, %c0_85, %c2_86, %c0_87] : memref<1x1x4x128xf32, #tpu.memory_space<vmem>>, vector<1x1x1x128xf32>
    %101 = vector.shape_cast %100 : vector<1x1x1x128xf32> to vector<128xf32>
    %102 = arith.extui %83 : vector<2x128xi1> to vector<2x128xi32>
    %103 = arith.sitofp %102 : vector<2x128xi32> to vector<2x128xf32>
    %cst_88 = arith.constant dense<0.000000e+00> : vector<128xf32>
    %104 = vector.multi_reduction <add>, %103, %cst_88 [0] : vector<2x128xf32> to vector<128xf32>
    %105 = arith.addf %101, %104 : vector<128xf32>
    %c0_89 = arith.constant 0 : index
    %c0_90 = arith.constant 0 : index
    %c2_91 = arith.constant 2 : index
    %c0_92 = arith.constant 0 : index
    %106 = vector.load %arg7[%c0_89, %c0_90, %c2_91, %c0_92] : memref<1x1x4x128xf32, #tpu.memory_space<vmem>>, vector<1x1x1x128xf32>
    %107 = vector.shape_cast %106 : vector<1x1x1x128xf32> to vector<128xf32>
    %108 = vector.shape_cast %105 : vector<128xf32> to vector<1x1x1x128xf32>
    tpu.vector_store %arg7[%c0_89, %c0_90, %c2_91, %c0_92], %108 {strides = array<i32>} : memref<1x1x4x128xf32, #tpu.memory_space<vmem>>, vector<1x1x1x128xf32>,
    %109 = vector.extract_strided_slice %18 {offsets = [3, 0, 0], sizes = [1, 2, 128], strides = [1, 1, 1]} : vector<4x2x128xf32> to vector<1x2x128xf32>
    %110 = vector.shape_cast %109 : vector<1x2x128xf32> to vector<2x128xf32>
    %c3_i32 = arith.constant 3 : i32
    %111 = vector.broadcast %c3_i32 : i32 to vector<2x128xi32>
    %112 = arith.cmpi eq, %21, %111 : vector<2x128xi32>
    %c0_93 = arith.constant 0 : index
    %c0_94 = arith.constant 0 : index
    %c3 = arith.constant 3 : index
    %c0_95 = arith.constant 0 : index
    %113 = vector.load %arg5[%c0_93, %c0_94, %c3, %c0_95] : memref<1x1x4x128xf32, #tpu.memory_space<vmem>>, vector<1x1x1x128xf32>
    %114 = vector.shape_cast %113 : vector<1x1x1x128xf32> to vector<128xf32>
    %cst_96 = arith.constant 0.000000e+00 : f32
    %115 = vector.broadcast %cst_96 : f32 to vector<2x128xf32>
    %116 = arith.select %112, %110, %115 : vector<2x128xi1>, vector<2x128xf32>
    %cst_97 = arith.constant dense<0.000000e+00> : vector<128xf32>
    %117 = vector.multi_reduction <add>, %116, %cst_97 [0] : vector<2x128xf32> to vector<128xf32>
    %118 = arith.addf %114, %117 : vector<128xf32>
    %c0_98 = arith.constant 0 : index
    %c0_99 = arith.constant 0 : index
    %c3_100 = arith.constant 3 : index
    %c0_101 = arith.constant 0 : index
    %119 = vector.load %arg5[%c0_98, %c0_99, %c3_100, %c0_101] : memref<1x1x4x128xf32, #tpu.memory_space<vmem>>, vector<1x1x1x128xf32>
    %120 = vector.shape_cast %119 : vector<1x1x1x128xf32> to vector<128xf32>
    %121 = vector.shape_cast %118 : vector<128xf32> to vector<1x1x1x128xf32>
    tpu.vector_store %arg5[%c0_98, %c0_99, %c3_100, %c0_101], %121 {strides = array<i32>} : memref<1x1x4x128xf32, #tpu.memory_space<vmem>>, vector<1x1x1x128xf32>,
    %c0_102 = arith.constant 0 : index
    %c0_103 = arith.constant 0 : index
    %c3_104 = arith.constant 3 : index
    %c0_105 = arith.constant 0 : index
    %122 = vector.load %arg6[%c0_102, %c0_103, %c3_104, %c0_105] : memref<1x1x4x128xf32, #tpu.memory_space<vmem>>, vector<1x1x1x128xf32>
    %123 = vector.shape_cast %122 : vector<1x1x1x128xf32> to vector<128xf32>
    %cst_106 = arith.constant dense<0.000000e+00> : vector<128xf32>
    %124 = vector.multi_reduction <add>, %110, %cst_106 [0] : vector<2x128xf32> to vector<128xf32>
    %125 = arith.addf %123, %124 : vector<128xf32>
    %c0_107 = arith.constant 0 : index
    %c0_108 = arith.constant 0 : index
    %c3_109 = arith.constant 3 : index
    %c0_110 = arith.constant 0 : index
    %126 = vector.load %arg6[%c0_107, %c0_108, %c3_109, %c0_110] : memref<1x1x4x128xf32, #tpu.memory_space<vmem>>, vector<1x1x1x128xf32>
    %127 = vector.shape_cast %126 : vector<1x1x1x128xf32> to vector<128xf32>
    %128 = vector.shape_cast %125 : vector<128xf32> to vector<1x1x1x128xf32>
    tpu.vector_store %arg6[%c0_107, %c0_108, %c3_109, %c0_110], %128 {strides = array<i32>} : memref<1x1x4x128xf32, #tpu.memory_space<vmem>>, vector<1x1x1x128xf32>,
    %c0_111 = arith.constant 0 : index
    %c0_112 = arith.constant 0 : index
    %c3_113 = arith.constant 3 : index
    %c0_114 = arith.constant 0 : index
    %129 = vector.load %arg7[%c0_111, %c0_112, %c3_113, %c0_114] : memref<1x1x4x128xf32, #tpu.memory_space<vmem>>, vector<1x1x1x128xf32>
    %130 = vector.shape_cast %129 : vector<1x1x1x128xf32> to vector<128xf32>
    %131 = arith.extui %112 : vector<2x128xi1> to vector<2x128xi32>
    %132 = arith.sitofp %131 : vector<2x128xi32> to vector<2x128xf32>
    %cst_115 = arith.constant dense<0.000000e+00> : vector<128xf32>
    %133 = vector.multi_reduction <add>, %132, %cst_115 [0] : vector<2x128xf32> to vector<128xf32>
    %134 = arith.addf %130, %133 : vector<128xf32>
    %c0_116 = arith.constant 0 : index
    %c0_117 = arith.constant 0 : index
    %c3_118 = arith.constant 3 : index
    %c0_119 = arith.constant 0 : index
    %135 = vector.load %arg7[%c0_116, %c0_117, %c3_118, %c0_119] : memref<1x1x4x128xf32, #tpu.memory_space<vmem>>, vector<1x1x1x128xf32>
    %136 = vector.shape_cast %135 : vector<1x1x1x128xf32> to vector<128xf32>
    %137 = vector.shape_cast %134 : vector<128xf32> to vector<1x1x1x128xf32>
    tpu.vector_store %arg7[%c0_116, %c0_117, %c3_118, %c0_119], %137 {strides = array<i32>} : memref<1x1x4x128xf32, #tpu.memory_space<vmem>>, vector<1x1x1x128xf32>,
    return
  }
  func.func @transform_0(%arg0: i32, %arg1: i32, %arg2: i32) -> (i32, i32, i32, i32) {
    %c1_i32 = arith.constant 1 : i32
    %0 = arith.muli %arg0, %c1_i32 : i32
    %1 = arith.addi %0, %arg2 : i32
    %c0_i32 = arith.constant 0 : i32
    %c0_i32_0 = arith.constant 0 : i32
    %c0_i32_1 = arith.constant 0 : i32
    return %arg1, %c0_i32, %1, %c0_i32_0 : i32, i32, i32, i32
  }
  func.func @transform_1(%arg0: i32, %arg1: i32, %arg2: i32) -> (i32, i32, i32, i32) {
    %c1_i32 = arith.constant 1 : i32
    %0 = arith.muli %arg0, %c1_i32 : i32
    %1 = arith.addi %0, %arg2 : i32
    %c0_i32 = arith.constant 0 : i32
    %c0_i32_0 = arith.constant 0 : i32
    %c0_i32_1 = arith.constant 0 : i32
    return %arg1, %c0_i32, %1, %c0_i32_0 : i32, i32, i32, i32
  }
  func.func @transform_2(%arg0: i32, %arg1: i32, %arg2: i32) -> (i32, i32, i32, i32) {
    %c0_i32 = arith.constant 0 : i32
    %c0_i32_0 = arith.constant 0 : i32
    %c0_i32_1 = arith.constant 0 : i32
    return %arg0, %arg1, %c0_i32, %c0_i32_0 : i32, i32, i32, i32
  }
  func.func @transform_3(%arg0: i32, %arg1: i32, %arg2: i32) -> (i32, i32, i32, i32) {
    %c0_i32 = arith.constant 0 : i32
    %c0_i32_0 = arith.constant 0 : i32
    %c0_i32_1 = arith.constant 0 : i32
    return %arg0, %arg1, %c0_i32, %c0_i32_0 : i32, i32, i32, i32
  }
  func.func @transform_4(%arg0: i32, %arg1: i32, %arg2: i32) -> (i32, i32, i32, i32) {
    %c0_i32 = arith.constant 0 : i32
    %c0_i32_0 = arith.constant 0 : i32
    %c0_i32_1 = arith.constant 0 : i32
    return %arg0, %arg1, %c0_i32, %c0_i32_0 : i32, i32, i32, i32
  }
}

</mosaic_0001>

<bundles_post_ra>
// kernel: tpu_custom_call.1
= control target key start
LH: loop header
LB: loop body
LE: loop exit
PB: predicated region body
PF: predicated region fallthrough
CT: control target
= control target key end

     0   :  { %10 = vsyncpa [#allocation3], 0  ;;  %s1355_s0 = inlined_call_operand.hbm [shape: f32[2,4,2,128], index: 0, kind: input, shape index: {}]   ;;  %s1356_s1 = inlined_call_operand.vmem [shape: s8[2,1,2,128], index: 1, kind: input, shape index: {}]   ;;  %s1357_s2 = inlined_call_operand.hbm [shape: f32[1,2,4,128], index: 2, kind: output, shape index: {0}]   ;;  %s1358_s3 = inlined_call_operand.hbm [shape: f32[1,2,4,128], index: 3, kind: output, shape index: {1}]   ;;  %s1359_s4 = inlined_call_operand.hbm [shape: f32[1,2,4,128], index: 4, kind: output, shape index: {2}]  }
   0x1   :  { %12 = vsyncpa [#allocation3 + $0x1], 0 }
   0x2   :  { %13 = vsyncpa [#allocation4], 0 }
   0x3   :  { %15 = vsyncpa [#allocation4 + $0x1], 0 }
   0x4   :  { %16 = vsyncpa [#allocation7], 0 }
   0x5   :  { %18 = vsyncpa [#allocation7 + $0x1], 0  ;;  %s1017_s15 = smov 0   ;;  %s1019_s16 = smov 0  }
   0x6   :  { %s1021_s17 = smov 0   ;;  %s1023_s18 = smov 0  }
   0x7   :  { %s1025_s19 = smov 0   ;;  %s1027_s20 = smov 0  }
   0x8 LB: > { %s1048_s21 = sadd.s32 4294967295, %s983_s20   ;;  %s1361_s22 = sadd.s32 4294967294, %s983_s20   ;;  %s983_s20 = sphi %s1027_s20, %s24_s20   ;;  %s979_s19 = sphi %s1025_s19, %s1376_s19   ;;  %s975_s18 = sphi %s1023_s18, %s1375_s18   ;;  %s971_s17 = sphi %s1021_s17, %s1374_s17   ;;  %s967_s16 = sphi %s1019_s16, %s1373_s16   ;;  %s963_s15 = sphi %s1017_s15, %s1372_s15  }
   0x9   : > { %s39_s23 = sadd.s32 1, %s979_s19  ;;  %s54_s24 = sadd.s32 1, %s971_s17 }
   0xa   : > { %p41_p0 = scmp.ge.s32.totalorder %s39_s23, 2  ;;  %p61_p1 = scmp.ne.s32.totalorder %s971_s17, %s967_s16 }
   0xb   : > { %p62_p2 = scmp.eq.s32.totalorder %s983_s20, 0  ;;  %p67_p3 = scmp.ne.s32.totalorder %s967_s16, %s963_s15 }
   0xc   : > { %s1378_s23 = smov (%p41_p0, %s39_s23), 0  ;;  %p68_p5 = scmp.eq.s32.totalorder %s1048_s21, 0 }
   0xd   : > { %p1060_p4 = por %p62_p2, %p61_p1  ;;  %s49_s26 = ssub.s32 %s979_s19, %s1378_s23 }
   0xe   : > { %p123_p6 = scmp.eq.s32.totalorder %s1048_s21, 1  ;;  %p52_p7 = scmp.eq.s32.totalorder %s49_s26, 0 }
   0xf   : > { %p1068_p8 = por %p68_p5, %p67_p3  ;;  %p129_p10 = scmp.eq.s32.totalorder %s1361_s22, 1 }
  0x10   : > { %p1072_p9 = por %p123_p6, %p61_p1  ;;  %p748_p13 = scmp.lt.s32.totalorder %s983_s20, 2 }
  0x11   : > { %s1079_s29 = scalar_select %p52_p7, %s971_s17, %s54_s24  }
  0x12   : > { %s1364_s28 = scalar_select %p1072_p9, 1, 0 }
  0x13   : > { %p1081_p11 = por %p129_p10, %p67_p3  ;;  %s205_s5 = sand.u32 1, %s971_s17  }
  0x14   : > { %s705_s6 = sshll.u32 %s205_s5, 3  ;;  %s725_s7 = sshll.u32 %s979_s19, 7 }
  0x15   : > { %s1365_s30 = scalar_select %p1081_p11, 1, 0 }
  0x16   : > { %s1092_s10 = scalar_lea.hbm %s1355_s0, %s725_s7  ;;  %s209_s11 = scalar_lea.vmem [#allocation2], %s705_s6 }
  0x17   : > { %s218_s12 = sshll.u32 %s209_s11, 4  ;;  %p1098_p0 = pnand %p748_p13, %p1060_p4  ;;  %s1094_s12 = int_to_ptr.vmem [resolvable:$true] %s218_s12 }
  0x18   : > { %s1103_s14 = scalar_lea.sflag [#allocation3], %s205_s5  ;;  %s811_s24 = scalar_lea.hbm %s1092_s10, 128 }
  0x19   : > { %p812_p2 = scmp.ne.s32.totalorder %s1092_s10, %s811_s24  ;;  %p813_p3 = pneg %p1098_p0 }
  0x1a   : > { %s816_s25 = scalar_lea.hbm %s1355_s0, 256  ;;  %p817_p4 = scmp.lt.u32.totalorder %s1092_s10, %s1355_s0 }
  0x1b   : > { %p814_p5 = pnand %p813_p3, %p812_p2  ;;  %p818_p7 = scmp.lt.u32.totalorder %s816_s25, %s811_s24 }
  0x1c   : > { %p820_p13 = scmp.lt.u32.totalorder %s811_s24, %s1092_s10 }
  0x1d   : > { %p815_p6 = pneg %p814_p5  ;;  %p819_p10 = por %p818_p7, %p817_p4 }
  0x1f   : > { %p821_p12 = por %p820_p13, %p819_p10 }
  0x21   : > { %p822_p1 = pnand %p821_p12, %p815_p6 }
  0x23   : > { %825 = shalt.err (!%p822_p1)
}
  0x24   : > { %s826_s5 = scalar_lea.vmem %s1094_s12, 128  ;;  %s985_s9 = smov [#allocation2]  }
  0x25   : > { %p827_p2 = scmp.ne.s32.totalorder %s1094_s12, %s826_s5  ;;  %s831_s11 = sshll.u32 %s985_s9, 4  ;;  %s832_s11 = int_to_ptr.vmem [resolvable:$false] %s831_s11 }
  0x26   : > { %s833_s26 = scalar_lea.vmem %s832_s11, 256  ;;  %p834_p9 = scmp.lt.s32.totalorder %s1094_s12, %s832_s11 }
  0x27   : > { %p829_p5 = pnand %p827_p2, %p813_p3  ;;  %p835_p4 = scmp.lt.s32.totalorder %s833_s26, %s826_s5 }
  0x29   : > { %p830_p11 = pneg %p829_p5  ;;  %p836_p7 = por %p835_p4, %p834_p9 }
  0x2b   : > { %p837_p10 = pnand %p836_p7, %p830_p11 }
  0x2d   : > { %840 = shalt.err (!%p837_p10)
}
  0x2e   : > { %s986_s24 = smov 32   ;;  %s987_s6 = smov 2  }
  0x2f   : > { %737 = dma.hbm_to_vmem [thread:$0]  (!%p1098_p0), %s1092_s10, 128, %s1094_s12, %s1103_s14, %s986_s24, %s986_s24, %s987_s6  }
  0x30   : > { %p237_p12 = scmp.lt.s32.totalorder %s983_s20, 3  ;;  %p1367_p1 = scmp.ge.s32.totalorder %s983_s20, 1 }
  0x32   : > { %p238_p3 = pnand %p1367_p1, %p237_p12 }
  0x33   : > { %s1135_s25 = sand.u32 (!%p238_p3), 1, %s967_s16  }
  0x34   : > { %241 = sbr.rel (%p238_p3) target bundleno = 193 (0xc1), region = 28  ;;  %s709_s7 = sshll.u32 (!%p238_p3), %s1135_s25, 3 }
  0x35   : > { %s244_s8 = scalar_lea.sflag (!%p238_p3), [#allocation3], %s1135_s25  ;;  %s247_s5 = scalar_lea.vmem (!%p238_p3), [#allocation2], %s709_s7 }
  0x3b   : > { %950 = dma.done.wait (%p1068_p8), %s244_s8, 128  }
  0x3c   : > { %952 = vsyncadd (%p1068_p8), %s244_s8, 4294967168  ;;  %s710_s10 = sshll.u32 %s1135_s25, 2  ;;  %p291_p9 = scmp.lt.s32.totalorder %s975_s18, 1  ;;  %v988_v0 = vmov 0.0   ;;  %vm309_vm0 = vcmask 1041408  }
  0x3d   : > { %s1145_s12 = scalar_lea.vmem [#allocation6], %s710_s10  ;;  %s1148_s13 = scalar_lea.vmem [#allocation5], %s710_s10  ;;  %v305_v1 = vld [vmem:[%s247_s5] sm:$0x3]  ;;  %v306_v2 = vld [vmem:[%s247_s5 + $0x2] sm:$0x3] }
  0x3e   : > { %303 = vst [vmem:[%s1145_s12] sm:$0xf] %v988_v0  ;;  %302 = vst [vmem:[%s1148_s13] sm:$0xf] %v988_v0  ;;  %s1151_s14 = scalar_lea.vmem [#allocation8], %s710_s10  ;;  %v307_v3 = vld [vmem:[%s247_s5 + $0x4] sm:$0x3]  ;;  %v310_v5 = vsel %vm309_vm0, %v305_v1, -inf }
  0x3f   : > { %304 = vst [vmem:[%s1151_s14] sm:$0xf] %v988_v0  ;;  %s292_s27 = scalar_select %p291_p9, %s975_s18, 1  ;;  %v308_v4 = vld [vmem:[%s247_s5 + $0x6] sm:$0x3]  ;;  %v311_v6 = vsel %vm309_vm0, %v306_v2, -inf  ;;  %v312_v7 = vsel %vm309_vm0, %v307_v3, -inf }
  0x40   : > { %v313_v8 = vsel %vm309_vm0, %v308_v4, -inf  ;;  %v314_v9 = vmax.f32 %v310_v5, %v311_v6  ;;  %s487_s24 = sand.u32 1, %s1048_s21   ;;  %s1212_s6 = sshll.u32 %s975_s18, 6 }
  0x41   : > { %s296_s26 = scalar_lea.vmem %s1356_s1, %s292_s27  ;;  %v315_v10 = vmax.f32 %v312_v7, %v313_v8  ;;  %s523_s7 = sshll.u32 %s1145_s12, 4  ;;  %s1224_s7 = int_to_ptr.vmem [resolvable:$true] %s523_s7 }
  0x42   : > { %v344_v11 = vld [vmem:[%s296_s26] sm:$0x1]  ;;  %s538_s18 = sshll.u32 %s1151_s14, 4  ;;  %s1222_s10 = scalar_lea.hbm %s1358_s3, %s1212_s6  ;;  %s1236_s18 = int_to_ptr.vmem [resolvable:$true] %s538_s18 }
  0x43   : > { %v1162_v12 = vunpack.c.0.s8 %v344_v11  ;;  %v316_v13 = vmax.f32 %v314_v9, %v315_v10  ;;  %s1234_s11 = scalar_lea.hbm %s1359_s4, %s1212_s6  ;;  %s1247_s26 = scalar_lea.sflag [#allocation7], %s487_s24 }
  0x44   : > { %s841_s8 = scalar_lea.vmem %s1224_s7, 64  ;;  %p1368_p11 = scmp.ne.s32.totalorder %s1364_s28, 0 }
  0x45   : > { %vm346_vm1 = vcmp.eq.s32.totalorder %v1162_v12, 0  ;;  %vm380_vm2 = vcmp.eq.s32.totalorder %v1162_v12, 1  ;;  %vm414_vm3 = vcmp.eq.s32.totalorder %v1162_v12, 2  ;;  %vm448_vm4 = vcmp.eq.s32.totalorder %v1162_v12, 3  ;;  %p842_p8 = scmp.ne.s32.totalorder %s1224_s7, %s841_s8  ;;  %s989_s5 = smov [#allocation6]  }
  0x46   : > { %v317_v14 = vsub.f32 %v305_v1, %v316_v13  ;;  %v318_v15 = vsub.f32 %v306_v2, %v316_v13  ;;  %v319_v16 = vsub.f32 %v307_v3, %v316_v13  ;;  %v320_v17 = vsub.f32 %v308_v4, %v316_v13  ;;  %v368_v48 = vld [vmem:[%s1151_s14] sm:$0x1]  ;;  %v402_v49 = vld [vmem:[%s1151_s14 + $0x1] sm:$0x1]  ;;  %v436_v50 = vld [vmem:[%s1151_s14 + $0x2] sm:$0x1] }
  0x47   : > { %v713_v18 = vsel %vm346_vm1, 1.0, %v988_v0  ;;  %v714_v19 = vsel %vm380_vm2, 1.0, %v988_v0  ;;  %v715_v20 = vsel %vm414_vm3, 1.0, %v988_v0  ;;  %v716_v21 = vsel %vm448_vm4, 1.0, %v988_v0  ;;  %v470_v0 = vld [vmem:[%s1151_s14 + $0x3] sm:$0x1]  ;;  %p843_p0 = pnand %p842_p8, %p1368_p11 }
  0x48   : > { %v321_v22 = vmul.f32 1.442695, %v317_v14  ;;  %v323_v23 = vmul.f32 1.442695, %v318_v15  ;;  %v325_v24 = vmul.f32 1.442695, %v319_v16 }
  0x49   : > { %v327_v25 = vmul.f32 1.442695, %v320_v17  ;;  %v371_v26 = vsel %vm309_vm0, %v713_v18, 0.0  ;;  %v405_v27 = vsel %vm309_vm0, %v714_v19, 0.0  ;;  %v439_v28 = vsel %vm309_vm0, %v715_v20, 0.0  ;;  %p844_p6 = pneg %p843_p0  ;;  %s845_s27 = sshll.u32 %s989_s5, 4  ;;  %s846_s27 = int_to_ptr.vmem [resolvable:$false] %s845_s27 }
  0x4a   : > { %801 = vpow2.f32 %v321_v22  ;;  %v372_v29 = vrot.slane %v371_v26, 4  ;;  %v406_v30 = vrot.slane %v405_v27, 4  ;;  %v440_v31 = vrot.slane %v439_v28, 4  ;;  %p848_p13 = scmp.lt.s32.totalorder %s1224_s7, %s846_s27 }
  0x4b   : > { %803 = vpow2.f32 %v323_v23  ;;  %v473_v32 = vsel %vm309_vm0, %v716_v21, 0.0 }
  0x4c   : > { %805 = vpow2.f32 %v325_v24  ;;  %v373_v33 = vadd.f32 %v372_v29, %v371_v26  ;;  %v407_v34 = vadd.f32 %v406_v30, %v405_v27  ;;  %v441_v35 = vadd.f32 %v440_v31, %v439_v28 }
  0x4d   : > { %807 = vpow2.f32 %v327_v25  ;;  %v474_v36 = vrot.slane %v473_v32, 4 }
  0x4e   : > { %v374_v37 = vrot.slane %v373_v33, 2  ;;  %v408_v38 = vrot.slane %v407_v34, 2  ;;  %v442_v39 = vrot.slane %v441_v35, 2 }
  0x4f   : > { %v475_v40 = vadd.f32 %v474_v36, %v473_v32 }
  0x50   : > { %v375_v41 = vadd.f32 %v374_v37, %v373_v33  ;;  %v409_v42 = vadd.f32 %v408_v38, %v407_v34  ;;  %v443_v43 = vadd.f32 %v442_v39, %v441_v35 }
  0x51   : > { %v476_v44 = vrot.slane %v475_v40, 2 }
  0x52   : > { %v376_v45 = vrot.slane %v375_v41, 1  ;;  %v410_v46 = vrot.slane %v409_v42, 1  ;;  %v444_v47 = vrot.slane %v443_v43, 1 }
  0x53   : > { %v477_v51 = vadd.f32 %v476_v44, %v475_v40 }
  0x54   : > { %v802_v52 = vpop.eup %801  ;;  %v377_v53 = vadd.f32 %v376_v45, %v375_v41  ;;  %v411_v54 = vadd.f32 %v410_v46, %v409_v42  ;;  %v445_v55 = vadd.f32 %v444_v47, %v443_v43 }
  0x55   : > { %v804_v56 = vpop.eup %803  ;;  %v329_v57 = vsel %vm309_vm0, %v802_v52, 0.0  ;;  %v478_v58 = vrot.slane %v477_v51, 1 }
  0x56   : > { %v806_v59 = vpop.eup %805  ;;  %v330_v60 = vsel %vm309_vm0, %v804_v56, 0.0  ;;  %v378_v61 = vadd.f32 %v377_v53, %v368_v48  ;;  %v412_v62 = vadd.f32 %v411_v54, %v402_v49  ;;  %v446_v63 = vadd.f32 %v445_v55, %v436_v50  ;;  %v358_v49 = vld [vmem:[%s1145_s12] sm:$0x1]  ;;  %v392_v50 = vld [vmem:[%s1145_s12 + $0x1] sm:$0x1] }
  0x57   : > { %v808_v1 = vpop.eup %807  ;;  %v331_v2 = vadd.f32 %v330_v60, %v329_v57  ;;  %v332_v3 = vsel %vm309_vm0, %v806_v59, 0.0  ;;  %v479_v4 = vadd.f32 %v478_v58, %v477_v51  ;;  %v426_v57 = vld [vmem:[%s1145_s12 + $0x2] sm:$0x1]  ;;  %v460_v60 = vld [vmem:[%s1145_s12 + $0x3] sm:$0x1] }
  0x58   : > { %v334_v5 = vsel %vm309_vm0, %v808_v1, 0.0  ;;  %379 = vst [vmem:[%s1151_s14] sm:$0x1] %v378_v61  ;;  %413 = vst [vmem:[%s1151_s14 + $0x1] sm:$0x1] %v412_v62 }
  0x59   : > { %447 = vst [vmem:[%s1151_s14 + $0x2] sm:$0x1] %v446_v63  ;;  %v333_v6 = vadd.f32 %v332_v3, %v331_v2  ;;  %v480_v7 = vadd.f32 %v479_v4, %v470_v0 }
  0x5b   : > { %v335_v8 = vadd.f32 %v334_v5, %v333_v6  ;;  %481 = vst [vmem:[%s1151_s14 + $0x3] sm:$0x1] %v480_v7  ;;  %s508_s14 = sshll.u32 %s1148_s13, 4  ;;  %s1302_s14 = int_to_ptr.vmem [resolvable:$true] %s508_s14 }
  0x5d   : > { %809 = vrcp.f32 %v335_v8 }
  0x67   : > { %v810_v9 = vpop.eup %809 }
  0x68   : > { %v337_v10 = vmul.f32 %v810_v9, %v335_v8 }
  0x6a   : > { %v338_v11 = vsub.f32 2.0, %v337_v10 }
  0x6c   : > { %v339_v13 = vmul.f32 %v810_v9, %v338_v11 }
  0x6e   : > { %v340_v14 = vmul.f32 %v802_v52, %v339_v13  ;;  %v341_v15 = vmul.f32 %v804_v56, %v339_v13  ;;  %v342_v16 = vmul.f32 %v806_v59, %v339_v13  ;;  %v343_v17 = vmul.f32 %v808_v1, %v339_v13 }
  0x70   : > { %v359_v18 = vsel %vm309_vm0, %v340_v14, 0.0  ;;  %v393_v19 = vsel %vm309_vm0, %v341_v15, 0.0  ;;  %v427_v20 = vsel %vm309_vm0, %v342_v16, 0.0  ;;  %v461_v21 = vsel %vm309_vm0, %v343_v17, 0.0 }
  0x71   : > { %v360_v22 = vrot.slane %v359_v18, 4  ;;  %v394_v23 = vrot.slane %v393_v19, 4  ;;  %v428_v24 = vrot.slane %v427_v20, 4  ;;  %v462_v25 = vrot.slane %v461_v21, 4 }
  0x72   : > { %v348_v26 = vsel %vm346_vm1, %v340_v14, 0.0  ;;  %v382_v27 = vsel %vm380_vm2, %v341_v15, 0.0  ;;  %v416_v28 = vsel %vm414_vm3, %v342_v16, 0.0  ;;  %v450_v29 = vsel %vm448_vm4, %v343_v17, 0.0  ;;  %v1228_v14 = vld [vmem:[%s1148_s13] sm:$0x1] }
  0x73   : > { %v361_v30 = vadd.f32 %v360_v22, %v359_v18  ;;  %v395_v31 = vadd.f32 %v394_v23, %v393_v19  ;;  %v429_v32 = vadd.f32 %v428_v24, %v427_v20  ;;  %v463_v33 = vadd.f32 %v462_v25, %v461_v21  ;;  %v381_v19 = vld [vmem:[%s1148_s13 + $0x1] sm:$0x1]  ;;  %v415_v20 = vld [vmem:[%s1148_s13 + $0x2] sm:$0x1]  ;;  %v449_v21 = vld [vmem:[%s1148_s13 + $0x3] sm:$0x1] }
  0x74   : > { %v349_v34 = vsel %vm309_vm0, %v348_v26, 0.0  ;;  %v383_v35 = vsel %vm309_vm0, %v382_v27, 0.0  ;;  %v417_v36 = vsel %vm309_vm0, %v416_v28, 0.0  ;;  %v451_v37 = vsel %vm309_vm0, %v450_v29, 0.0 }
  0x75   : > { %v362_v38 = vrot.slane %v361_v30, 2  ;;  %v396_v39 = vrot.slane %v395_v31, 2  ;;  %v430_v40 = vrot.slane %v429_v32, 2  ;;  %v464_v12 = vrot.slane %v463_v33, 2 }
  0x76   : > { %v350_v41 = vrot.slane %v349_v34, 4  ;;  %v384_v42 = vrot.slane %v383_v35, 4  ;;  %v418_v43 = vrot.slane %v417_v36, 4  ;;  %v452_v44 = vrot.slane %v451_v37, 4 }
  0x77   : > { %v363_v45 = vadd.f32 %v362_v38, %v361_v30  ;;  %v397_v46 = vadd.f32 %v396_v39, %v395_v31  ;;  %v431_v47 = vadd.f32 %v430_v40, %v429_v32  ;;  %v465_v48 = vadd.f32 %v464_v12, %v463_v33 }
  0x78   : > { %v351_v51 = vadd.f32 %v350_v41, %v349_v34  ;;  %v385_v52 = vadd.f32 %v384_v42, %v383_v35  ;;  %v419_v53 = vadd.f32 %v418_v43, %v417_v36  ;;  %v453_v54 = vadd.f32 %v452_v44, %v451_v37 }
  0x79   : > { %v364_v55 = vrot.slane %v363_v45, 1  ;;  %v398_v56 = vrot.slane %v397_v46, 1  ;;  %v432_v58 = vrot.slane %v431_v47, 1  ;;  %v466_v59 = vrot.slane %v465_v48, 1 }
  0x7a   : > { %v352_v61 = vrot.slane %v351_v51, 2  ;;  %v386_v62 = vrot.slane %v385_v52, 2  ;;  %v420_v63 = vrot.slane %v419_v53, 2  ;;  %v454_v0 = vrot.slane %v453_v54, 2 }
  0x7b   : > { %v365_v1 = vadd.f32 %v364_v55, %v363_v45  ;;  %v399_v2 = vadd.f32 %v398_v56, %v397_v46  ;;  %v433_v3 = vadd.f32 %v432_v58, %v431_v47  ;;  %v467_v4 = vadd.f32 %v466_v59, %v465_v48 }
  0x7c   : > { %v353_v5 = vadd.f32 %v352_v61, %v351_v51  ;;  %v387_v6 = vadd.f32 %v386_v62, %v385_v52  ;;  %v421_v7 = vadd.f32 %v420_v63, %v419_v53  ;;  %v455_v8 = vadd.f32 %v454_v0, %v453_v54 }
  0x7d   : > { %v366_v9 = vadd.f32 %v365_v1, %v358_v49  ;;  %v400_v10 = vadd.f32 %v399_v2, %v392_v50  ;;  %v434_v11 = vadd.f32 %v433_v3, %v426_v57  ;;  %v468_v13 = vadd.f32 %v467_v4, %v460_v60 }
  0x7e   : > { %v354_v15 = vrot.slane %v353_v5, 1  ;;  %v388_v16 = vrot.slane %v387_v6, 1  ;;  %v422_v17 = vrot.slane %v421_v7, 1  ;;  %v456_v18 = vrot.slane %v455_v8, 1 }
  0x7f   : > { %367 = vst [vmem:[%s1145_s12] sm:$0x1] %v366_v9  ;;  %401 = vst [vmem:[%s1145_s12 + $0x1] sm:$0x1] %v400_v10 }
  0x80   : > { %435 = vst [vmem:[%s1145_s12 + $0x2] sm:$0x1] %v434_v11  ;;  %469 = vst [vmem:[%s1145_s12 + $0x3] sm:$0x1] %v468_v13  ;;  %v355_v22 = vadd.f32 %v354_v15, %v353_v5  ;;  %v389_v23 = vadd.f32 %v388_v16, %v387_v6  ;;  %v423_v24 = vadd.f32 %v422_v17, %v421_v7  ;;  %s847_s12 = scalar_lea.vmem %s846_s27, 128 }
  0x81   : > { %v457_v25 = vadd.f32 %v456_v18, %v455_v8  ;;  %p849_p2 = scmp.lt.s32.totalorder %s847_s12, %s841_s8 }
  0x83   : > { %p850_p5 = por %p849_p2, %p848_p13 }
  0x85   : > { %p851_p4 = pnand %p850_p5, %p844_p6 }
  0x87   : > { %854 = shalt.err (!%p851_p4)
}
  0x88   : > { %s855_s21 = scalar_lea.hbm %s1222_s10, 64  ;;  %s859_s5 = scalar_lea.hbm %s1358_s3, 128 }
  0x89   : > { %p856_p7 = scmp.ne.s32.totalorder %s1222_s10, %s855_s21  ;;  %p860_p1 = scmp.lt.u32.totalorder %s1222_s10, %s1358_s3 }
  0x8a   : > { %p861_p3 = scmp.lt.u32.totalorder %s859_s5, %s855_s21  ;;  %p863_p8 = scmp.lt.u32.totalorder %s855_s21, %s1222_s10 }
  0x8b   : > { %p857_p10 = pnand %p856_p7, %p1368_p11 }
  0x8c   : > { %p862_p9 = por %p861_p3, %p860_p1 }
  0x8d   : > { %p858_p12 = pneg %p857_p10 }
  0x8e   : > { %p864_p0 = por %p863_p8, %p862_p9 }
  0x90   : > { %p865_p6 = pnand %p864_p0, %p858_p12 }
  0x92   : > { %868 = shalt.err (!%p865_p6)
}
  0x93   : > { %729 = dma.vmem_to_hbm [thread:$0]  (%p1368_p11), %s1224_s7, 64, %s1222_s10, %s1247_s26  }
  0x94   : > { %s869_s8 = scalar_lea.vmem %s1236_s18, 64  ;;  %s990_s22 = smov [#allocation8]  }
  0x95   : > { %p870_p13 = scmp.ne.s32.totalorder %s1236_s18, %s869_s8  ;;  %s873_s12 = sshll.u32 %s990_s22, 4  ;;  %s874_s12 = int_to_ptr.vmem [resolvable:$false] %s873_s12 }
  0x96   : > { %s875_s21 = scalar_lea.vmem %s874_s12, 128  ;;  %p876_p4 = scmp.lt.s32.totalorder %s1236_s18, %s874_s12 }
  0x97   : > { %p871_p2 = pnand %p870_p13, %p1368_p11  ;;  %p877_p7 = scmp.lt.s32.totalorder %s875_s21, %s869_s8 }
  0x99   : > { %p872_p5 = pneg %p871_p2  ;;  %p878_p10 = por %p877_p7, %p876_p4 }
  0x9b   : > { %p879_p12 = pnand %p878_p10, %p872_p5 }
  0x9d   : > { %882 = shalt.err (!%p879_p12)
}
  0x9e   : > { %s883_s7 = scalar_lea.hbm %s1234_s11, 64  ;;  %s887_s9 = scalar_lea.hbm %s1359_s4, 128 }
  0x9f   : > { %p884_p1 = scmp.ne.s32.totalorder %s1234_s11, %s883_s7  ;;  %p888_p8 = scmp.lt.u32.totalorder %s1234_s11, %s1359_s4 }
  0xa0   : > { %p889_p0 = scmp.lt.u32.totalorder %s887_s9, %s883_s7  ;;  %p891_p13 = scmp.lt.u32.totalorder %s883_s7, %s1234_s11 }
  0xa1   : > { %p885_p3 = pnand %p884_p1, %p1368_p11 }
  0xa2   : > { %p890_p6 = por %p889_p0, %p888_p8 }
  0xa3   : > { %p886_p9 = pneg %p885_p3 }
  0xa4   : > { %p892_p2 = por %p891_p13, %p890_p6 }
  0xa6   : > { %p893_p5 = pnand %p892_p2, %p886_p9 }
  0xa8   : > { %896 = shalt.err (!%p893_p5)
}
  0xa9   : > { %730 = dma.vmem_to_hbm [thread:$0]  (%p1368_p11), %s1236_s18, 64, %s1234_s11, %s1247_s26   ;;  %v356_v26 = vadd.f32 %v355_v22, %v1228_v14  ;;  %v390_v27 = vadd.f32 %v389_v23, %v381_v19  ;;  %v424_v28 = vadd.f32 %v423_v24, %v415_v20  ;;  %v458_v29 = vadd.f32 %v457_v25, %v449_v21 }
  0xaa   : > { %s1298_s12 = scalar_lea.hbm %s1357_s2, %s1212_s6  ;;  %s483_s18 = scalar_lea.sflag [#allocation4], %s1135_s25 }
  0xab   : > { %357 = vst [vmem:[%s1148_s13] sm:$0x1] %v356_v26  ;;  %391 = vst [vmem:[%s1148_s13 + $0x1] sm:$0x1] %v390_v27  ;;  %s897_s11 = scalar_lea.vmem %s1302_s14, 64  ;;  %s991_s26 = smov [#allocation5]  }
  0xac   : > { %425 = vst [vmem:[%s1148_s13 + $0x2] sm:$0x1] %v424_v28  ;;  %459 = vst [vmem:[%s1148_s13 + $0x3] sm:$0x1] %v458_v29  ;;  %p898_p4 = scmp.ne.s32.totalorder %s1302_s14, %s897_s11  ;;  %s901_s21 = sshll.u32 %s991_s26, 4  ;;  %s902_s21 = int_to_ptr.vmem [resolvable:$false] %s901_s21 }
  0xad   : > { %s903_s6 = scalar_lea.vmem %s902_s21, 128  ;;  %p904_p12 = scmp.lt.s32.totalorder %s1302_s14, %s902_s21 }
  0xae   : > { %p899_p7 = pnand %p898_p4, %p1368_p11  ;;  %p905_p1 = scmp.lt.s32.totalorder %s903_s6, %s897_s11 }
  0xb0   : > { %p900_p10 = pneg %p899_p7  ;;  %p906_p3 = por %p905_p1, %p904_p12 }
  0xb2   : > { %p907_p9 = pnand %p906_p3, %p900_p10 }
  0xb4   : > { %910 = shalt.err (!%p907_p9)
}
  0xb5   : > { %s911_s25 = scalar_lea.hbm %s1298_s12, 64  ;;  %s915_s10 = scalar_lea.hbm %s1357_s2, 128 }
  0xb6   : > { %p912_p8 = scmp.ne.s32.totalorder %s1298_s12, %s911_s25  ;;  %p916_p13 = scmp.lt.u32.totalorder %s1298_s12, %s1357_s2 }
  0xb7   : > { %p917_p2 = scmp.lt.u32.totalorder %s915_s10, %s911_s25  ;;  %p919_p4 = scmp.lt.u32.totalorder %s911_s25, %s1298_s12 }
  0xb8   : > { %p913_p0 = pnand %p912_p8, %p1368_p11 }
  0xb9   : > { %p918_p5 = por %p917_p2, %p916_p13 }
  0xba   : > { %p914_p6 = pneg %p913_p0 }
  0xbb   : > { %p920_p7 = por %p919_p4, %p918_p5 }
  0xbd   : > { %p921_p10 = pnand %p920_p7, %p914_p6 }
  0xbf   : > { %924 = shalt.err (!%p921_p10)
}
  0xc0   : > { %728 = dma.vmem_to_hbm [thread:$0]  (%p1368_p11), %s1302_s14, 64, %s1298_s12, %s483_s18  }
  0xc1 PF: > { %s550_s5 = sand.u32 1, %s963_s15   ;;  %p1369_p12 = scmp.ne.s32.totalorder %s1365_s30, 0 }
  0xc2   : > { %p1370_p1 = scmp.ge.s32.totalorder %s983_s20, 2  ;;  %s551_s27 = scalar_lea.sflag [#allocation4], %s550_s5 }
  0xc4   : > { %p739_p3 = pnand %p1370_p1, %p1369_p12 }
  0xc6   : > { %954 = dma.done.wait (!%p739_p3), %s551_s27, 64  }
  0xc7   : > { %956 = vsyncadd (!%p739_p3), %s551_s27, 4294967232  ;;  %s1371_s8 = sadd.s32 4294967294, %s983_s20  }
  0xc8   : > { %s559_s22 = sand.u32 1, %s1371_s8  }
  0xc9   : > { %s560_s11 = scalar_lea.sflag [#allocation7], %s559_s22 }
  0xca   : > { %958 = dma.done.wait (!%p739_p3), %s560_s11, 128  }
  0xcb   : > { %960 = vsyncadd (!%p739_p3), %s560_s11, 4294967168  ;;  %s24_s20 = sadd.s32 1, %s983_s20   ;;  %s1372_s15 = smov %s967_s16 }
  0xcc   : > { %p21_p11 = scmp.ge.s32.totalorder %s24_s20, 4   ;;  %s1373_s16 = smov %s971_s17 }
  0xcd   : > { %s1374_s17 = smov %s1079_s29  ;;  %s1375_s18 = smov %s979_s19 }
  0xce   : > { %s1376_s19 = smov %s1378_s23  ;;  %23 = sbr.rel (!%p21_p11) target bundleno = 8 (0x8), region = 112 }
  0xd5   :  { %574 = vsyncpa [#allocation3], 1 }
  0xd6   :  { %576 = vsyncpa [#allocation3 + $0x1], 1 }
  0xd7   :  { %577 = vsyncpa [#allocation4], 1 }
  0xd8   :  { %579 = vsyncpa [#allocation4 + $0x1], 1 }
  0xd9   :  { %580 = vsyncpa [#allocation7], 1 }
  0xda   :  { %582 = vsyncpa [#allocation7 + $0x1], 1 }

</bundles_post_ra>
